<compile_context>
chip_gen: v7x
topology: tpu7x:2x2x1
jax: 0.10.0
libtpu: 0.0.40
codegen_flags: <defaults>
</compile_context>

<pallas_src>
import functools

import jax
import jax.numpy as jnp
from jax.experimental import pallas as pl
from jax.experimental.pallas import tpu as pltpu

HIDDEN = 32
LANES = 128


def _round_up(a, m):
    return -(-a // m) * m


def pinn_kernel(x_ref, w1_ref, b1_ref, w2_ref, b2_ref, o_ref, *, ch, n_chunks):
    # x_ref/o_ref: (TR, 128) f32 lane-dense batch tile (VMEM), TR == ch * n_chunks.
    # w1_ref, b1_ref, w2_ref: (32,) f32 in SMEM; b2_ref: (1,) f32 in SMEM.

    def chunk_out(xc):
        # Unrolled 32-term FMA + tanh chain, register-resident on a (ch, 128) chunk.
        # Two partial accumulators break the serial dependent-add chain; b2 is folded
        # into the final sum (no full-tile zero-init pass).
        acc0 = w2_ref[0] * jnp.tanh(xc * w1_ref[0] + b1_ref[0])
        acc1 = w2_ref[1] * jnp.tanh(xc * w1_ref[1] + b1_ref[1])
        for j in range(2, HIDDEN, 2):
            acc0 = acc0 + w2_ref[j] * jnp.tanh(xc * w1_ref[j] + b1_ref[j])
            acc1 = acc1 + w2_ref[j + 1] * jnp.tanh(xc * w1_ref[j + 1] + b1_ref[j + 1])
        return acc0 + acc1 + b2_ref[0]

    if n_chunks == 1:
        o_ref[...] = chunk_out(x_ref[...]).astype(o_ref.dtype)
    else:
        @pl.loop(0, n_chunks)
        def _(c):
            r = pl.multiple_of(c * ch, ch)
            xc = x_ref[pl.ds(r, ch), :]
            o_ref[pl.ds(r, ch), :] = chunk_out(xc).astype(o_ref.dtype)


def pinn_forward(x, w1, b1, w2, b2, *, chunk_rows=32, target_steps=8,
                 max_block_rows=256, block_rows=None):
    """Fused PINN forward. x: (N, 1); w1: (1, 32); b1: (32,); w2: (32, 1); b2: (1,)."""
    N = x.shape[0]
    xf = x.reshape(-1).astype(jnp.float32)

    # Lane-dense relayout: batch -> (rows, 128) rows of the 128-lane axis.
    rows = -(-N // LANES)
    rows8 = _round_up(rows, 8)                       # sublane multiple
    ch = _round_up(min(chunk_rows, rows8), 8)        # chunk rows (>= 1 vreg, default 4)
    if block_rows is not None:
        tr = _round_up(block_rows, ch)
    else:
        # Aim for ~target_steps grid steps; keep tiles small (<=256 rows = 128 KiB)
        # so padding waste and per-tile VMEM stay bounded and the grid stays >1
        # for megacore sharding / DMA-compute overlap on larger batches.
        tr = min(max_block_rows, max(ch, _round_up(-(-rows8 // target_steps), ch)))
    tr = max(tr, ch)
    rows_padded = _round_up(rows8, tr)
    grid = rows_padded // tr
    n_chunks = tr // ch

    pad = rows_padded * LANES - N
    if pad:
        xf = jnp.pad(xf, (0, pad))
    x2 = xf.reshape(rows_padded, LANES)

    kernel = functools.partial(pinn_kernel, ch=ch, n_chunks=n_chunks)

    out2 = pl.pallas_call(
        kernel,
        out_shape=jax.ShapeDtypeStruct((rows_padded, LANES), jnp.float32),
        grid_spec=pltpu.PrefetchScalarGridSpec(
            num_scalar_prefetch=0,
            grid=(grid,),
            in_specs=[
                pl.BlockSpec((tr, LANES), lambda i: (i, 0)),        # x tile (VMEM)
                pl.BlockSpec(memory_space=pltpu.MemorySpace.SMEM),  # w1 (32,)
                pl.BlockSpec(memory_space=pltpu.MemorySpace.SMEM),  # b1 (32,)
                pl.BlockSpec(memory_space=pltpu.MemorySpace.SMEM),  # w2 (32,)
                pl.BlockSpec(memory_space=pltpu.MemorySpace.SMEM),  # b2 (1,)
            ],
            out_specs=pl.BlockSpec((tr, LANES), lambda i: (i, 0)),
        ),
        compiler_params=pltpu.CompilerParams(
            dimension_semantics=("parallel",),  # batch grid shards across TCs (v7x)
        ),
    )(
        x2,
        w1.reshape(-1).astype(jnp.float32),
        b1.reshape(-1).astype(jnp.float32),
        w2.reshape(-1).astype(jnp.float32),
        b2.reshape(-1).astype(jnp.float32),
    )

    out = out2.reshape(-1)
    if pad:
        out = out[:N]
    return out.reshape(N, 1)


def init_params(key):
    # Mimic torch.nn.Linear default init: U(-1/sqrt(fan_in), 1/sqrt(fan_in)).
    k1, k2, k3, k4 = jax.random.split(key, 4)
    bound1 = 1.0                      # layer1 fan_in = 1
    bound2 = 1.0 / jnp.sqrt(32.0)     # layer2 fan_in = 32
    w1 = jax.random.uniform(k1, (1, HIDDEN), jnp.float32, -bound1, bound1)
    b1 = jax.random.uniform(k2, (HIDDEN,), jnp.float32, -bound1, bound1)
    w2 = jax.random.uniform(k3, (HIDDEN, 1), jnp.float32, -bound2, bound2)
    b2 = jax.random.uniform(k4, (1,), jnp.float32, -bound2, bound2)
    return w1, b1, w2, b2


if __name__ == "__main__":
    key = jax.random.PRNGKey(0)
    k_x, k_p = jax.random.split(key)
    w1, b1, w2, b2 = init_params(k_p)

    def ref_fn(x):
        # Pure-JAX reference of the PyTorch forward: tanh(x @ W1 + b1) @ W2 + b2.
        return jnp.tanh(x @ w1 + b1) @ w2 + b2

    # Case 1: small batch, not a multiple of 128 -> exercises padding (grid=1, 1 chunk).
    x_a = jax.random.uniform(k_x, (200, 1), jnp.float32, 0.0, 1.0)
    out_a = jax.block_until_ready(pinn_forward(x_a, w1, b1, w2, b2))
    ref_a = ref_fn(x_a)
    assert out_a.shape == (200, 1)
    assert jnp.allclose(out_a, ref_a, atol=2e-5, rtol=1e-5), float(jnp.max(jnp.abs(out_a - ref_a)))

    # Case 2: larger batch with forced smaller tile -> exercises multi-step grid and the
    # in-kernel chunk loop (tr=64 rows, ch=32 -> grid=2, n_chunks=2).
    x_b = jax.random.uniform(k_x, (10000, 1), jnp.float32, -1.0, 1.0)
    out_b = jax.block_until_ready(pinn_forward(x_b, w1, b1, w2, b2, block_rows=64))
    ref_b = ref_fn(x_b)
    assert out_b.shape == (10000, 1)
    assert jnp.allclose(out_b, ref_b, atol=2e-5, rtol=1e-5), float(jnp.max(jnp.abs(out_b - ref_b)))

    print("KERNEL_OK")
</pallas_src>

<mosaic_0001>
module attributes {stable_mosaic.version = 11 : i64} {
  func.func @pinn_kernel(%arg0: i32, %arg1: memref<8x128xf32, #tpu.memory_space<vmem>>, %arg2: memref<32xf32, #tpu.memory_space<smem>>, %arg3: memref<32xf32, #tpu.memory_space<smem>>, %arg4: memref<32xf32, #tpu.memory_space<smem>>, %arg5: memref<1xf32, #tpu.memory_space<smem>>, %arg6: memref<8x128xf32, #tpu.memory_space<vmem>>) attributes {dimension_semantics = [#tpu.dimension_semantics<parallel>], iteration_bounds = array<i64: 1>, scalar_prefetch = 0 : i64, scratch_operands = 0 : i64, tpu.core_type = #tpu.core_type<tc>, window_params = [{transform_indices = @transform_0, window_bounds = array<i64: 8, 128>}, {transform_indices = @transform_1, window_bounds = array<i64: 32>}, {transform_indices = @transform_2, window_bounds = array<i64: 32>}, {transform_indices = @transform_3, window_bounds = array<i64: 32>}, {transform_indices = @transform_4, window_bounds = array<i64: 1>}, {transform_indices = @transform_5, window_bounds = array<i64: 8, 128>}]} {
    %c0 = arith.constant 0 : index
    %c0_0 = arith.constant 0 : index
    %0 = vector.load %arg1[%c0, %c0_0] : memref<8x128xf32, #tpu.memory_space<vmem>>, vector<8x128xf32>
    %c0_1 = arith.constant 0 : index
    %1 = memref.load %arg4[%c0_1] : memref<32xf32, #tpu.memory_space<smem>>
    %c0_2 = arith.constant 0 : index
    %2 = memref.load %arg2[%c0_2] : memref<32xf32, #tpu.memory_space<smem>>
    %3 = vector.broadcast %2 : f32 to vector<8x128xf32>
    %4 = arith.mulf %0, %3 : vector<8x128xf32>
    %c0_3 = arith.constant 0 : index
    %5 = memref.load %arg3[%c0_3] : memref<32xf32, #tpu.memory_space<smem>>
    %6 = vector.broadcast %5 : f32 to vector<8x128xf32>
    %7 = arith.addf %4, %6 : vector<8x128xf32>
    %8 = math.tanh %7 : vector<8x128xf32>
    %9 = vector.broadcast %1 : f32 to vector<8x128xf32>
    %10 = arith.mulf %9, %8 : vector<8x128xf32>
    %c1 = arith.constant 1 : index
    %11 = memref.load %arg4[%c1] : memref<32xf32, #tpu.memory_space<smem>>
    %c1_4 = arith.constant 1 : index
    %12 = memref.load %arg2[%c1_4] : memref<32xf32, #tpu.memory_space<smem>>
    %13 = vector.broadcast %12 : f32 to vector<8x128xf32>
    %14 = arith.mulf %0, %13 : vector<8x128xf32>
    %c1_5 = arith.constant 1 : index
    %15 = memref.load %arg3[%c1_5] : memref<32xf32, #tpu.memory_space<smem>>
    %16 = vector.broadcast %15 : f32 to vector<8x128xf32>
    %17 = arith.addf %14, %16 : vector<8x128xf32>
    %18 = math.tanh %17 : vector<8x128xf32>
    %19 = vector.broadcast %11 : f32 to vector<8x128xf32>
    %20 = arith.mulf %19, %18 : vector<8x128xf32>
    %c2 = arith.constant 2 : index
    %21 = memref.load %arg4[%c2] : memref<32xf32, #tpu.memory_space<smem>>
    %c2_6 = arith.constant 2 : index
    %22 = memref.load %arg2[%c2_6] : memref<32xf32, #tpu.memory_space<smem>>
    %23 = vector.broadcast %22 : f32 to vector<8x128xf32>
    %24 = arith.mulf %0, %23 : vector<8x128xf32>
    %c2_7 = arith.constant 2 : index
    %25 = memref.load %arg3[%c2_7] : memref<32xf32, #tpu.memory_space<smem>>
    %26 = vector.broadcast %25 : f32 to vector<8x128xf32>
    %27 = arith.addf %24, %26 : vector<8x128xf32>
    %28 = math.tanh %27 : vector<8x128xf32>
    %29 = vector.broadcast %21 : f32 to vector<8x128xf32>
    %30 = arith.mulf %29, %28 : vector<8x128xf32>
    %31 = arith.addf %10, %30 : vector<8x128xf32>
    %c3 = arith.constant 3 : index
    %32 = memref.load %arg4[%c3] : memref<32xf32, #tpu.memory_space<smem>>
    %c3_8 = arith.constant 3 : index
    %33 = memref.load %arg2[%c3_8] : memref<32xf32, #tpu.memory_space<smem>>
    %34 = vector.broadcast %33 : f32 to vector<8x128xf32>
    %35 = arith.mulf %0, %34 : vector<8x128xf32>
    %c3_9 = arith.constant 3 : index
    %36 = memref.load %arg3[%c3_9] : memref<32xf32, #tpu.memory_space<smem>>
    %37 = vector.broadcast %36 : f32 to vector<8x128xf32>
    %38 = arith.addf %35, %37 : vector<8x128xf32>
    %39 = math.tanh %38 : vector<8x128xf32>
    %40 = vector.broadcast %32 : f32 to vector<8x128xf32>
    %41 = arith.mulf %40, %39 : vector<8x128xf32>
    %42 = arith.addf %20, %41 : vector<8x128xf32>
    %c4 = arith.constant 4 : index
    %43 = memref.load %arg4[%c4] : memref<32xf32, #tpu.memory_space<smem>>
    %c4_10 = arith.constant 4 : index
    %44 = memref.load %arg2[%c4_10] : memref<32xf32, #tpu.memory_space<smem>>
    %45 = vector.broadcast %44 : f32 to vector<8x128xf32>
    %46 = arith.mulf %0, %45 : vector<8x128xf32>
    %c4_11 = arith.constant 4 : index
    %47 = memref.load %arg3[%c4_11] : memref<32xf32, #tpu.memory_space<smem>>
    %48 = vector.broadcast %47 : f32 to vector<8x128xf32>
    %49 = arith.addf %46, %48 : vector<8x128xf32>
    %50 = math.tanh %49 : vector<8x128xf32>
    %51 = vector.broadcast %43 : f32 to vector<8x128xf32>
    %52 = arith.mulf %51, %50 : vector<8x128xf32>
    %53 = arith.addf %31, %52 : vector<8x128xf32>
    %c5 = arith.constant 5 : index
    %54 = memref.load %arg4[%c5] : memref<32xf32, #tpu.memory_space<smem>>
    %c5_12 = arith.constant 5 : index
    %55 = memref.load %arg2[%c5_12] : memref<32xf32, #tpu.memory_space<smem>>
    %56 = vector.broadcast %55 : f32 to vector<8x128xf32>
    %57 = arith.mulf %0, %56 : vector<8x128xf32>
    %c5_13 = arith.constant 5 : index
    %58 = memref.load %arg3[%c5_13] : memref<32xf32, #tpu.memory_space<smem>>
    %59 = vector.broadcast %58 : f32 to vector<8x128xf32>
    %60 = arith.addf %57, %59 : vector<8x128xf32>
    %61 = math.tanh %60 : vector<8x128xf32>
    %62 = vector.broadcast %54 : f32 to vector<8x128xf32>
    %63 = arith.mulf %62, %61 : vector<8x128xf32>
    %64 = arith.addf %42, %63 : vector<8x128xf32>
    %c6 = arith.constant 6 : index
    %65 = memref.load %arg4[%c6] : memref<32xf32, #tpu.memory_space<smem>>
    %c6_14 = arith.constant 6 : index
    %66 = memref.load %arg2[%c6_14] : memref<32xf32, #tpu.memory_space<smem>>
    %67 = vector.broadcast %66 : f32 to vector<8x128xf32>
    %68 = arith.mulf %0, %67 : vector<8x128xf32>
    %c6_15 = arith.constant 6 : index
    %69 = memref.load %arg3[%c6_15] : memref<32xf32, #tpu.memory_space<smem>>
    %70 = vector.broadcast %69 : f32 to vector<8x128xf32>
    %71 = arith.addf %68, %70 : vector<8x128xf32>
    %72 = math.tanh %71 : vector<8x128xf32>
    %73 = vector.broadcast %65 : f32 to vector<8x128xf32>
    %74 = arith.mulf %73, %72 : vector<8x128xf32>
    %75 = arith.addf %53, %74 : vector<8x128xf32>
    %c7 = arith.constant 7 : index
    %76 = memref.load %arg4[%c7] : memref<32xf32, #tpu.memory_space<smem>>
    %c7_16 = arith.constant 7 : index
    %77 = memref.load %arg2[%c7_16] : memref<32xf32, #tpu.memory_space<smem>>
    %78 = vector.broadcast %77 : f32 to vector<8x128xf32>
    %79 = arith.mulf %0, %78 : vector<8x128xf32>
    %c7_17 = arith.constant 7 : index
    %80 = memref.load %arg3[%c7_17] : memref<32xf32, #tpu.memory_space<smem>>
    %81 = vector.broadcast %80 : f32 to vector<8x128xf32>
    %82 = arith.addf %79, %81 : vector<8x128xf32>
    %83 = math.tanh %82 : vector<8x128xf32>
    %84 = vector.broadcast %76 : f32 to vector<8x128xf32>
    %85 = arith.mulf %84, %83 : vector<8x128xf32>
    %86 = arith.addf %64, %85 : vector<8x128xf32>
    %c8 = arith.constant 8 : index
    %87 = memref.load %arg4[%c8] : memref<32xf32, #tpu.memory_space<smem>>
    %c8_18 = arith.constant 8 : index
    %88 = memref.load %arg2[%c8_18] : memref<32xf32, #tpu.memory_space<smem>>
    %89 = vector.broadcast %88 : f32 to vector<8x128xf32>
    %90 = arith.mulf %0, %89 : vector<8x128xf32>
    %c8_19 = arith.constant 8 : index
    %91 = memref.load %arg3[%c8_19] : memref<32xf32, #tpu.memory_space<smem>>
    %92 = vector.broadcast %91 : f32 to vector<8x128xf32>
    %93 = arith.addf %90, %92 : vector<8x128xf32>
    %94 = math.tanh %93 : vector<8x128xf32>
    %95 = vector.broadcast %87 : f32 to vector<8x128xf32>
    %96 = arith.mulf %95, %94 : vector<8x128xf32>
    %97 = arith.addf %75, %96 : vector<8x128xf32>
    %c9 = arith.constant 9 : index
    %98 = memref.load %arg4[%c9] : memref<32xf32, #tpu.memory_space<smem>>
    %c9_20 = arith.constant 9 : index
    %99 = memref.load %arg2[%c9_20] : memref<32xf32, #tpu.memory_space<smem>>
    %100 = vector.broadcast %99 : f32 to vector<8x128xf32>
    %101 = arith.mulf %0, %100 : vector<8x128xf32>
    %c9_21 = arith.constant 9 : index
    %102 = memref.load %arg3[%c9_21] : memref<32xf32, #tpu.memory_space<smem>>
    %103 = vector.broadcast %102 : f32 to vector<8x128xf32>
    %104 = arith.addf %101, %103 : vector<8x128xf32>
    %105 = math.tanh %104 : vector<8x128xf32>
    %106 = vector.broadcast %98 : f32 to vector<8x128xf32>
    %107 = arith.mulf %106, %105 : vector<8x128xf32>
    %108 = arith.addf %86, %107 : vector<8x128xf32>
    %c10 = arith.constant 10 : index
    %109 = memref.load %arg4[%c10] : memref<32xf32, #tpu.memory_space<smem>>
    %c10_22 = arith.constant 10 : index
    %110 = memref.load %arg2[%c10_22] : memref<32xf32, #tpu.memory_space<smem>>
    %111 = vector.broadcast %110 : f32 to vector<8x128xf32>
    %112 = arith.mulf %0, %111 : vector<8x128xf32>
    %c10_23 = arith.constant 10 : index
    %113 = memref.load %arg3[%c10_23] : memref<32xf32, #tpu.memory_space<smem>>
    %114 = vector.broadcast %113 : f32 to vector<8x128xf32>
    %115 = arith.addf %112, %114 : vector<8x128xf32>
    %116 = math.tanh %115 : vector<8x128xf32>
    %117 = vector.broadcast %109 : f32 to vector<8x128xf32>
    %118 = arith.mulf %117, %116 : vector<8x128xf32>
    %119 = arith.addf %97, %118 : vector<8x128xf32>
    %c11 = arith.constant 11 : index
    %120 = memref.load %arg4[%c11] : memref<32xf32, #tpu.memory_space<smem>>
    %c11_24 = arith.constant 11 : index
    %121 = memref.load %arg2[%c11_24] : memref<32xf32, #tpu.memory_space<smem>>
    %122 = vector.broadcast %121 : f32 to vector<8x128xf32>
    %123 = arith.mulf %0, %122 : vector<8x128xf32>
    %c11_25 = arith.constant 11 : index
    %124 = memref.load %arg3[%c11_25] : memref<32xf32, #tpu.memory_space<smem>>
    %125 = vector.broadcast %124 : f32 to vector<8x128xf32>
    %126 = arith.addf %123, %125 : vector<8x128xf32>
    %127 = math.tanh %126 : vector<8x128xf32>
    %128 = vector.broadcast %120 : f32 to vector<8x128xf32>
    %129 = arith.mulf %128, %127 : vector<8x128xf32>
    %130 = arith.addf %108, %129 : vector<8x128xf32>
    %c12 = arith.constant 12 : index
    %131 = memref.load %arg4[%c12] : memref<32xf32, #tpu.memory_space<smem>>
    %c12_26 = arith.constant 12 : index
    %132 = memref.load %arg2[%c12_26] : memref<32xf32, #tpu.memory_space<smem>>
    %133 = vector.broadcast %132 : f32 to vector<8x128xf32>
    %134 = arith.mulf %0, %133 : vector<8x128xf32>
    %c12_27 = arith.constant 12 : index
    %135 = memref.load %arg3[%c12_27] : memref<32xf32, #tpu.memory_space<smem>>
    %136 = vector.broadcast %135 : f32 to vector<8x128xf32>
    %137 = arith.addf %134, %136 : vector<8x128xf32>
    %138 = math.tanh %137 : vector<8x128xf32>
    %139 = vector.broadcast %131 : f32 to vector<8x128xf32>
    %140 = arith.mulf %139, %138 : vector<8x128xf32>
    %141 = arith.addf %119, %140 : vector<8x128xf32>
    %c13 = arith.constant 13 : index
    %142 = memref.load %arg4[%c13] : memref<32xf32, #tpu.memory_space<smem>>
    %c13_28 = arith.constant 13 : index
    %143 = memref.load %arg2[%c13_28] : memref<32xf32, #tpu.memory_space<smem>>
    %144 = vector.broadcast %143 : f32 to vector<8x128xf32>
    %145 = arith.mulf %0, %144 : vector<8x128xf32>
    %c13_29 = arith.constant 13 : index
    %146 = memref.load %arg3[%c13_29] : memref<32xf32, #tpu.memory_space<smem>>
    %147 = vector.broadcast %146 : f32 to vector<8x128xf32>
    %148 = arith.addf %145, %147 : vector<8x128xf32>
    %149 = math.tanh %148 : vector<8x128xf32>
    %150 = vector.broadcast %142 : f32 to vector<8x128xf32>
    %151 = arith.mulf %150, %149 : vector<8x128xf32>
    %152 = arith.addf %130, %151 : vector<8x128xf32>
    %c14 = arith.constant 14 : index
    %153 = memref.load %arg4[%c14] : memref<32xf32, #tpu.memory_space<smem>>
    %c14_30 = arith.constant 14 : index
    %154 = memref.load %arg2[%c14_30] : memref<32xf32, #tpu.memory_space<smem>>
    %155 = vector.broadcast %154 : f32 to vector<8x128xf32>
    %156 = arith.mulf %0, %155 : vector<8x128xf32>
    %c14_31 = arith.constant 14 : index
    %157 = memref.load %arg3[%c14_31] : memref<32xf32, #tpu.memory_space<smem>>
    %158 = vector.broadcast %157 : f32 to vector<8x128xf32>
    %159 = arith.addf %156, %158 : vector<8x128xf32>
    %160 = math.tanh %159 : vector<8x128xf32>
    %161 = vector.broadcast %153 : f32 to vector<8x128xf32>
    %162 = arith.mulf %161, %160 : vector<8x128xf32>
    %163 = arith.addf %141, %162 : vector<8x128xf32>
    %c15 = arith.constant 15 : index
    %164 = memref.load %arg4[%c15] : memref<32xf32, #tpu.memory_space<smem>>
    %c15_32 = arith.constant 15 : index
    %165 = memref.load %arg2[%c15_32] : memref<32xf32, #tpu.memory_space<smem>>
    %166 = vector.broadcast %165 : f32 to vector<8x128xf32>
    %167 = arith.mulf %0, %166 : vector<8x128xf32>
    %c15_33 = arith.constant 15 : index
    %168 = memref.load %arg3[%c15_33] : memref<32xf32, #tpu.memory_space<smem>>
    %169 = vector.broadcast %168 : f32 to vector<8x128xf32>
    %170 = arith.addf %167, %169 : vector<8x128xf32>
    %171 = math.tanh %170 : vector<8x128xf32>
    %172 = vector.broadcast %164 : f32 to vector<8x128xf32>
    %173 = arith.mulf %172, %171 : vector<8x128xf32>
    %174 = arith.addf %152, %173 : vector<8x128xf32>
    %c16 = arith.constant 16 : index
    %175 = memref.load %arg4[%c16] : memref<32xf32, #tpu.memory_space<smem>>
    %c16_34 = arith.constant 16 : index
    %176 = memref.load %arg2[%c16_34] : memref<32xf32, #tpu.memory_space<smem>>
    %177 = vector.broadcast %176 : f32 to vector<8x128xf32>
    %178 = arith.mulf %0, %177 : vector<8x128xf32>
    %c16_35 = arith.constant 16 : index
    %179 = memref.load %arg3[%c16_35] : memref<32xf32, #tpu.memory_space<smem>>
    %180 = vector.broadcast %179 : f32 to vector<8x128xf32>
    %181 = arith.addf %178, %180 : vector<8x128xf32>
    %182 = math.tanh %181 : vector<8x128xf32>
    %183 = vector.broadcast %175 : f32 to vector<8x128xf32>
    %184 = arith.mulf %183, %182 : vector<8x128xf32>
    %185 = arith.addf %163, %184 : vector<8x128xf32>
    %c17 = arith.constant 17 : index
    %186 = memref.load %arg4[%c17] : memref<32xf32, #tpu.memory_space<smem>>
    %c17_36 = arith.constant 17 : index
    %187 = memref.load %arg2[%c17_36] : memref<32xf32, #tpu.memory_space<smem>>
    %188 = vector.broadcast %187 : f32 to vector<8x128xf32>
    %189 = arith.mulf %0, %188 : vector<8x128xf32>
    %c17_37 = arith.constant 17 : index
    %190 = memref.load %arg3[%c17_37] : memref<32xf32, #tpu.memory_space<smem>>
    %191 = vector.broadcast %190 : f32 to vector<8x128xf32>
    %192 = arith.addf %189, %191 : vector<8x128xf32>
    %193 = math.tanh %192 : vector<8x128xf32>
    %194 = vector.broadcast %186 : f32 to vector<8x128xf32>
    %195 = arith.mulf %194, %193 : vector<8x128xf32>
    %196 = arith.addf %174, %195 : vector<8x128xf32>
    %c18 = arith.constant 18 : index
    %197 = memref.load %arg4[%c18] : memref<32xf32, #tpu.memory_space<smem>>
    %c18_38 = arith.constant 18 : index
    %198 = memref.load %arg2[%c18_38] : memref<32xf32, #tpu.memory_space<smem>>
    %199 = vector.broadcast %198 : f32 to vector<8x128xf32>
    %200 = arith.mulf %0, %199 : vector<8x128xf32>
    %c18_39 = arith.constant 18 : index
    %201 = memref.load %arg3[%c18_39] : memref<32xf32, #tpu.memory_space<smem>>
    %202 = vector.broadcast %201 : f32 to vector<8x128xf32>
    %203 = arith.addf %200, %202 : vector<8x128xf32>
    %204 = math.tanh %203 : vector<8x128xf32>
    %205 = vector.broadcast %197 : f32 to vector<8x128xf32>
    %206 = arith.mulf %205, %204 : vector<8x128xf32>
    %207 = arith.addf %185, %206 : vector<8x128xf32>
    %c19 = arith.constant 19 : index
    %208 = memref.load %arg4[%c19] : memref<32xf32, #tpu.memory_space<smem>>
    %c19_40 = arith.constant 19 : index
    %209 = memref.load %arg2[%c19_40] : memref<32xf32, #tpu.memory_space<smem>>
    %210 = vector.broadcast %209 : f32 to vector<8x128xf32>
    %211 = arith.mulf %0, %210 : vector<8x128xf32>
    %c19_41 = arith.constant 19 : index
    %212 = memref.load %arg3[%c19_41] : memref<32xf32, #tpu.memory_space<smem>>
    %213 = vector.broadcast %212 : f32 to vector<8x128xf32>
    %214 = arith.addf %211, %213 : vector<8x128xf32>
    %215 = math.tanh %214 : vector<8x128xf32>
    %216 = vector.broadcast %208 : f32 to vector<8x128xf32>
    %217 = arith.mulf %216, %215 : vector<8x128xf32>
    %218 = arith.addf %196, %217 : vector<8x128xf32>
    %c20 = arith.constant 20 : index
    %219 = memref.load %arg4[%c20] : memref<32xf32, #tpu.memory_space<smem>>
    %c20_42 = arith.constant 20 : index
    %220 = memref.load %arg2[%c20_42] : memref<32xf32, #tpu.memory_space<smem>>
    %221 = vector.broadcast %220 : f32 to vector<8x128xf32>
    %222 = arith.mulf %0, %221 : vector<8x128xf32>
    %c20_43 = arith.constant 20 : index
    %223 = memref.load %arg3[%c20_43] : memref<32xf32, #tpu.memory_space<smem>>
    %224 = vector.broadcast %223 : f32 to vector<8x128xf32>
    %225 = arith.addf %222, %224 : vector<8x128xf32>
    %226 = math.tanh %225 : vector<8x128xf32>
    %227 = vector.broadcast %219 : f32 to vector<8x128xf32>
    %228 = arith.mulf %227, %226 : vector<8x128xf32>
    %229 = arith.addf %207, %228 : vector<8x128xf32>
    %c21 = arith.constant 21 : index
    %230 = memref.load %arg4[%c21] : memref<32xf32, #tpu.memory_space<smem>>
    %c21_44 = arith.constant 21 : index
    %231 = memref.load %arg2[%c21_44] : memref<32xf32, #tpu.memory_space<smem>>
    %232 = vector.broadcast %231 : f32 to vector<8x128xf32>
    %233 = arith.mulf %0, %232 : vector<8x128xf32>
    %c21_45 = arith.constant 21 : index
    %234 = memref.load %arg3[%c21_45] : memref<32xf32, #tpu.memory_space<smem>>
    %235 = vector.broadcast %234 : f32 to vector<8x128xf32>
    %236 = arith.addf %233, %235 : vector<8x128xf32>
    %237 = math.tanh %236 : vector<8x128xf32>
    %238 = vector.broadcast %230 : f32 to vector<8x128xf32>
    %239 = arith.mulf %238, %237 : vector<8x128xf32>
    %240 = arith.addf %218, %239 : vector<8x128xf32>
    %c22 = arith.constant 22 : index
    %241 = memref.load %arg4[%c22] : memref<32xf32, #tpu.memory_space<smem>>
    %c22_46 = arith.constant 22 : index
    %242 = memref.load %arg2[%c22_46] : memref<32xf32, #tpu.memory_space<smem>>
    %243 = vector.broadcast %242 : f32 to vector<8x128xf32>
    %244 = arith.mulf %0, %243 : vector<8x128xf32>
    %c22_47 = arith.constant 22 : index
    %245 = memref.load %arg3[%c22_47] : memref<32xf32, #tpu.memory_space<smem>>
    %246 = vector.broadcast %245 : f32 to vector<8x128xf32>
    %247 = arith.addf %244, %246 : vector<8x128xf32>
    %248 = math.tanh %247 : vector<8x128xf32>
    %249 = vector.broadcast %241 : f32 to vector<8x128xf32>
    %250 = arith.mulf %249, %248 : vector<8x128xf32>
    %251 = arith.addf %229, %250 : vector<8x128xf32>
    %c23 = arith.constant 23 : index
    %252 = memref.load %arg4[%c23] : memref<32xf32, #tpu.memory_space<smem>>
    %c23_48 = arith.constant 23 : index
    %253 = memref.load %arg2[%c23_48] : memref<32xf32, #tpu.memory_space<smem>>
    %254 = vector.broadcast %253 : f32 to vector<8x128xf32>
    %255 = arith.mulf %0, %254 : vector<8x128xf32>
    %c23_49 = arith.constant 23 : index
    %256 = memref.load %arg3[%c23_49] : memref<32xf32, #tpu.memory_space<smem>>
    %257 = vector.broadcast %256 : f32 to vector<8x128xf32>
    %258 = arith.addf %255, %257 : vector<8x128xf32>
    %259 = math.tanh %258 : vector<8x128xf32>
    %260 = vector.broadcast %252 : f32 to vector<8x128xf32>
    %261 = arith.mulf %260, %259 : vector<8x128xf32>
    %262 = arith.addf %240, %261 : vector<8x128xf32>
    %c24 = arith.constant 24 : index
    %263 = memref.load %arg4[%c24] : memref<32xf32, #tpu.memory_space<smem>>
    %c24_50 = arith.constant 24 : index
    %264 = memref.load %arg2[%c24_50] : memref<32xf32, #tpu.memory_space<smem>>
    %265 = vector.broadcast %264 : f32 to vector<8x128xf32>
    %266 = arith.mulf %0, %265 : vector<8x128xf32>
    %c24_51 = arith.constant 24 : index
    %267 = memref.load %arg3[%c24_51] : memref<32xf32, #tpu.memory_space<smem>>
    %268 = vector.broadcast %267 : f32 to vector<8x128xf32>
    %269 = arith.addf %266, %268 : vector<8x128xf32>
    %270 = math.tanh %269 : vector<8x128xf32>
    %271 = vector.broadcast %263 : f32 to vector<8x128xf32>
    %272 = arith.mulf %271, %270 : vector<8x128xf32>
    %273 = arith.addf %251, %272 : vector<8x128xf32>
    %c25 = arith.constant 25 : index
    %274 = memref.load %arg4[%c25] : memref<32xf32, #tpu.memory_space<smem>>
    %c25_52 = arith.constant 25 : index
    %275 = memref.load %arg2[%c25_52] : memref<32xf32, #tpu.memory_space<smem>>
    %276 = vector.broadcast %275 : f32 to vector<8x128xf32>
    %277 = arith.mulf %0, %276 : vector<8x128xf32>
    %c25_53 = arith.constant 25 : index
    %278 = memref.load %arg3[%c25_53] : memref<32xf32, #tpu.memory_space<smem>>
    %279 = vector.broadcast %278 : f32 to vector<8x128xf32>
    %280 = arith.addf %277, %279 : vector<8x128xf32>
    %281 = math.tanh %280 : vector<8x128xf32>
    %282 = vector.broadcast %274 : f32 to vector<8x128xf32>
    %283 = arith.mulf %282, %281 : vector<8x128xf32>
    %284 = arith.addf %262, %283 : vector<8x128xf32>
    %c26 = arith.constant 26 : index
    %285 = memref.load %arg4[%c26] : memref<32xf32, #tpu.memory_space<smem>>
    %c26_54 = arith.constant 26 : index
    %286 = memref.load %arg2[%c26_54] : memref<32xf32, #tpu.memory_space<smem>>
    %287 = vector.broadcast %286 : f32 to vector<8x128xf32>
    %288 = arith.mulf %0, %287 : vector<8x128xf32>
    %c26_55 = arith.constant 26 : index
    %289 = memref.load %arg3[%c26_55] : memref<32xf32, #tpu.memory_space<smem>>
    %290 = vector.broadcast %289 : f32 to vector<8x128xf32>
    %291 = arith.addf %288, %290 : vector<8x128xf32>
    %292 = math.tanh %291 : vector<8x128xf32>
    %293 = vector.broadcast %285 : f32 to vector<8x128xf32>
    %294 = arith.mulf %293, %292 : vector<8x128xf32>
    %295 = arith.addf %273, %294 : vector<8x128xf32>
    %c27 = arith.constant 27 : index
    %296 = memref.load %arg4[%c27] : memref<32xf32, #tpu.memory_space<smem>>
    %c27_56 = arith.constant 27 : index
    %297 = memref.load %arg2[%c27_56] : memref<32xf32, #tpu.memory_space<smem>>
    %298 = vector.broadcast %297 : f32 to vector<8x128xf32>
    %299 = arith.mulf %0, %298 : vector<8x128xf32>
    %c27_57 = arith.constant 27 : index
    %300 = memref.load %arg3[%c27_57] : memref<32xf32, #tpu.memory_space<smem>>
    %301 = vector.broadcast %300 : f32 to vector<8x128xf32>
    %302 = arith.addf %299, %301 : vector<8x128xf32>
    %303 = math.tanh %302 : vector<8x128xf32>
    %304 = vector.broadcast %296 : f32 to vector<8x128xf32>
    %305 = arith.mulf %304, %303 : vector<8x128xf32>
    %306 = arith.addf %284, %305 : vector<8x128xf32>
    %c28 = arith.constant 28 : index
    %307 = memref.load %arg4[%c28] : memref<32xf32, #tpu.memory_space<smem>>
    %c28_58 = arith.constant 28 : index
    %308 = memref.load %arg2[%c28_58] : memref<32xf32, #tpu.memory_space<smem>>
    %309 = vector.broadcast %308 : f32 to vector<8x128xf32>
    %310 = arith.mulf %0, %309 : vector<8x128xf32>
    %c28_59 = arith.constant 28 : index
    %311 = memref.load %arg3[%c28_59] : memref<32xf32, #tpu.memory_space<smem>>
    %312 = vector.broadcast %311 : f32 to vector<8x128xf32>
    %313 = arith.addf %310, %312 : vector<8x128xf32>
    %314 = math.tanh %313 : vector<8x128xf32>
    %315 = vector.broadcast %307 : f32 to vector<8x128xf32>
    %316 = arith.mulf %315, %314 : vector<8x128xf32>
    %317 = arith.addf %295, %316 : vector<8x128xf32>
    %c29 = arith.constant 29 : index
    %318 = memref.load %arg4[%c29] : memref<32xf32, #tpu.memory_space<smem>>
    %c29_60 = arith.constant 29 : index
    %319 = memref.load %arg2[%c29_60] : memref<32xf32, #tpu.memory_space<smem>>
    %320 = vector.broadcast %319 : f32 to vector<8x128xf32>
    %321 = arith.mulf %0, %320 : vector<8x128xf32>
    %c29_61 = arith.constant 29 : index
    %322 = memref.load %arg3[%c29_61] : memref<32xf32, #tpu.memory_space<smem>>
    %323 = vector.broadcast %322 : f32 to vector<8x128xf32>
    %324 = arith.addf %321, %323 : vector<8x128xf32>
    %325 = math.tanh %324 : vector<8x128xf32>
    %326 = vector.broadcast %318 : f32 to vector<8x128xf32>
    %327 = arith.mulf %326, %325 : vector<8x128xf32>
    %328 = arith.addf %306, %327 : vector<8x128xf32>
    %c30 = arith.constant 30 : index
    %329 = memref.load %arg4[%c30] : memref<32xf32, #tpu.memory_space<smem>>
    %c30_62 = arith.constant 30 : index
    %330 = memref.load %arg2[%c30_62] : memref<32xf32, #tpu.memory_space<smem>>
    %331 = vector.broadcast %330 : f32 to vector<8x128xf32>
    %332 = arith.mulf %0, %331 : vector<8x128xf32>
    %c30_63 = arith.constant 30 : index
    %333 = memref.load %arg3[%c30_63] : memref<32xf32, #tpu.memory_space<smem>>
    %334 = vector.broadcast %333 : f32 to vector<8x128xf32>
    %335 = arith.addf %332, %334 : vector<8x128xf32>
    %336 = math.tanh %335 : vector<8x128xf32>
    %337 = vector.broadcast %329 : f32 to vector<8x128xf32>
    %338 = arith.mulf %337, %336 : vector<8x128xf32>
    %339 = arith.addf %317, %338 : vector<8x128xf32>
    %c31 = arith.constant 31 : index
    %340 = memref.load %arg4[%c31] : memref<32xf32, #tpu.memory_space<smem>>
    %c31_64 = arith.constant 31 : index
    %341 = memref.load %arg2[%c31_64] : memref<32xf32, #tpu.memory_space<smem>>
    %342 = vector.broadcast %341 : f32 to vector<8x128xf32>
    %343 = arith.mulf %0, %342 : vector<8x128xf32>
    %c31_65 = arith.constant 31 : index
    %344 = memref.load %arg3[%c31_65] : memref<32xf32, #tpu.memory_space<smem>>
    %345 = vector.broadcast %344 : f32 to vector<8x128xf32>
    %346 = arith.addf %343, %345 : vector<8x128xf32>
    %347 = math.tanh %346 : vector<8x128xf32>
    %348 = vector.broadcast %340 : f32 to vector<8x128xf32>
    %349 = arith.mulf %348, %347 : vector<8x128xf32>
    %350 = arith.addf %328, %349 : vector<8x128xf32>
    %351 = arith.addf %339, %350 : vector<8x128xf32>
    %c0_66 = arith.constant 0 : index
    %352 = memref.load %arg5[%c0_66] : memref<1xf32, #tpu.memory_space<smem>>
    %353 = vector.broadcast %352 : f32 to vector<8x128xf32>
    %354 = arith.addf %351, %353 : vector<8x128xf32>
    %c0_67 = arith.constant 0 : index
    %c0_68 = arith.constant 0 : index
    %355 = vector.load %arg6[%c0_67, %c0_68] : memref<8x128xf32, #tpu.memory_space<vmem>>, vector<8x128xf32>
    tpu.vector_store %arg6[%c0_67, %c0_68], %354 {strides = array<i32>} : memref<8x128xf32, #tpu.memory_space<vmem>>, vector<8x128xf32>,
    return
  }
  func.func @transform_0(%arg0: i32) -> (i32, i32) {
    %c0_i32 = arith.constant 0 : i32
    %c0_i32_0 = arith.constant 0 : i32
    return %arg0, %c0_i32 : i32, i32
  }
  func.func @transform_1(%arg0: i32) -> i32 {
    %c0_i32 = arith.constant 0 : i32
    %c0_i32_0 = arith.constant 0 : i32
    return %c0_i32 : i32
  }
  func.func @transform_2(%arg0: i32) -> i32 {
    %c0_i32 = arith.constant 0 : i32
    %c0_i32_0 = arith.constant 0 : i32
    return %c0_i32 : i32
  }
  func.func @transform_3(%arg0: i32) -> i32 {
    %c0_i32 = arith.constant 0 : i32
    %c0_i32_0 = arith.constant 0 : i32
    return %c0_i32 : i32
  }
  func.func @transform_4(%arg0: i32) -> i32 {
    %c0_i32 = arith.constant 0 : i32
    %c0_i32_0 = arith.constant 0 : i32
    return %c0_i32 : i32
  }
  func.func @transform_5(%arg0: i32) -> (i32, i32) {
    %c0_i32 = arith.constant 0 : i32
    %c0_i32_0 = arith.constant 0 : i32
    return %arg0, %c0_i32 : i32, i32
  }
}

</mosaic_0001>

<bundles_post_ra>
// kernel: tpu_custom_call.1
= control target key start
LH: loop header
LB: loop body
LE: loop exit
PB: predicated region body
PF: predicated region fallthrough
CT: control target
= control target key end

     0   :  { %11 = vsyncpa [#allocation4], 0  ;;  %s1053_s0 = inlined_call_operand.hbm [shape: f32[8,128], index: 0, kind: input, shape index: {}]   ;;  %s1054_s1 = inlined_call_operand.vmem [shape: f32[32], index: 1, kind: input, shape index: {}]   ;;  %s1055_s2 = inlined_call_operand.vmem [shape: f32[32], index: 2, kind: input, shape index: {}]   ;;  %s1056_s3 = inlined_call_operand.vmem [shape: f32[32], index: 3, kind: input, shape index: {}]   ;;  %s1057_s4 = inlined_call_operand.<no memory space> [shape: f32[1], index: 4, kind: input, shape index: {}]   ;;  %s1058_s5 = inlined_call_operand.hbm [shape: f32[8,128], index: 5, kind: output, shape index: {}]  }
   0x1   :  { %12 = vsyncpa [#allocation6], 0 }
   0x2   :  { %13 = vsyncpa [#allocation9], 0  ;;  %s41_s20 = sshll.u32 %s1055_s2, 4  ;;  %s42_s20 = int_to_ptr.vmem [resolvable:$true] %s41_s20 }
   0x3   :  { %14 = vsyncpa [#allocation5], 0  ;;  %s605_s21 = scalar_lea.vmem %s42_s20, 16  ;;  %p610_p1 = scmp.lt.s32.totalorder %s42_s20, %s42_s20 }
   0x4   :  { %p606_p0 = scmp.ne.s32.totalorder %s42_s20, %s605_s21  ;;  %p611_p2 = scmp.lt.s32.totalorder %s605_s21, %s605_s21 }
   0x6   :  { %p612_p3 = por %p611_p2, %p610_p1 }
   0x8   :  { %p613_p4 = pnand %p612_p3, %p606_p0 }
   0xa   :  { %616 = shalt.err (!%p613_p4)
}
   0xb   :  { %s693_s22 = smov [#allocation8]   ;;  %s694_s23 = smov [#allocation3]  }
   0xc   :  { %44 = dma.vmem_to_smem %s42_s20, 16, %s693_s22, [#allocation9]  }
   0xd   :  { %s21_s24 = sshll.u32 %s694_s23, 4  ;;  %s31_s27 = sshll.u32 %s1054_s1, 4  ;;  %s22_s24 = int_to_ptr.vmem [resolvable:$true] %s21_s24  ;;  %s32_s27 = int_to_ptr.vmem [resolvable:$true] %s31_s27 }
   0xe   :  { %s617_s29 = scalar_lea.hbm %s1053_s0, 128 }
   0xf   :  { %p618_p5 = scmp.ne.s32.totalorder %s1053_s0, %s617_s29  ;;  %p621_p6 = scmp.lt.u32.totalorder %s617_s29, %s1053_s0 }
  0x11   :  { %p623_p7 = pnand %p621_p6, %p618_p5 }
  0x13   :  { %626 = shalt.err (!%p623_p7)
}
  0x14   :  { %s627_s9 = scalar_lea.vmem %s22_s24, 128  ;;  %p632_p9 = scmp.lt.s32.totalorder %s22_s24, %s22_s24 }
  0x15   :  { %p628_p8 = scmp.ne.s32.totalorder %s22_s24, %s627_s9  ;;  %p633_p10 = scmp.lt.s32.totalorder %s627_s9, %s627_s9 }
  0x17   :  { %p634_p11 = por %p633_p10, %p632_p9 }
  0x19   :  { %p635_p12 = pnand %p634_p11, %p628_p8 }
  0x1b   :  { %638 = shalt.err (!%p635_p12)
}
  0x1c   :  { %24 = dma.hbm_to_vmem [thread:$0]  %s1053_s0, 128, %s22_s24, [#allocation4]  }
  0x1d   :  { %s51_s13 = sshll.u32 %s1056_s3, 4  ;;  %s639_s14 = scalar_lea.vmem %s32_s27, 16  ;;  %s52_s13 = int_to_ptr.vmem [resolvable:$true] %s51_s13 }
  0x1e   :  { %p640_p13 = scmp.ne.s32.totalorder %s32_s27, %s639_s14  ;;  %p644_p0 = scmp.lt.s32.totalorder %s32_s27, %s32_s27 }
  0x1f   :  { %p645_p1 = scmp.lt.s32.totalorder %s639_s14, %s639_s14 }
  0x21   :  { %p646_p2 = por %p645_p1, %p644_p0 }
  0x23   :  { %p647_p3 = pnand %p646_p2, %p640_p13 }
  0x25   :  { %650 = shalt.err (!%p647_p3)
}
  0x26   :  { %s695_s15 = smov [#allocation7]   ;;  %s651_s16 = scalar_lea.vmem %s52_s13, 16 }
  0x27   :  { %34 = dma.vmem_to_smem %s32_s27, 16, %s695_s15, [#allocation6]  }
  0x28   :  { %p652_p4 = scmp.ne.s32.totalorder %s52_s13, %s651_s16  ;;  %p656_p5 = scmp.lt.s32.totalorder %s52_s13, %s52_s13 }
  0x29   :  { %p657_p6 = scmp.lt.s32.totalorder %s651_s16, %s651_s16 }
  0x2b   :  { %p658_p7 = por %p657_p6, %p656_p5 }
  0x2d   :  { %p659_p8 = pnand %p658_p7, %p652_p4 }
  0x2f   :  { %662 = shalt.err (!%p659_p8)
}
  0x30   :  { %s696_s0 = smov [#allocation10]  }
  0x31   :  { %54 = dma.vmem_to_smem %s52_s13, 16, %s696_s0, [#allocation9]  }
  0x32   :  { %685 = dma.done.wait [#allocation4], 128  }
  0x33   :  { %686 = vsyncadd [#allocation4], 4294967168 }
  0x34   :  { %687 = dma.done.wait [#allocation6], 16  }
  0x35   :  { %688 = vsyncadd [#allocation6], 4294967280 }
  0x36   :  { %689 = dma.done.wait [#allocation9], 32  }
  0x37   :  { %690 = vsyncadd [#allocation9], 4294967264 }
  0x38   :  { %69 = sfence }
  0x39   :  { %s72_s3 = sld [smem:[#allocation7]]  ;;  %s444_s18 = sld [smem:[#allocation7 + $0x1]]  ;;  %v749_v0 = vld [vmem:[#allocation3] sm:$0xff] }
  0x3a   :  { %s75_s17 = sld [smem:[#allocation8]]  ;;  %s445_s19 = sld [smem:[#allocation8 + $0x1]] }
  0x3b   :  { %s447_s20 = sld [smem:[#allocation7 + $0x2]]  ;;  %s751_s21 = sld [smem:[#allocation10]] }
  0x3c   :  { %s448_s22 = sld [smem:[#allocation8 + $0x2]]  ;;  %s450_s23 = sld [smem:[#allocation7 + $0x3]] }
  0x3d   :  { %s753_s24 = sld [smem:[#allocation8 + $0x3]]  ;;  %s755_s25 = sld [smem:[#allocation10 + $0x1]] }
  0x3e   :  { %s453_s26 = sld [smem:[#allocation7 + $0x4]]  ;;  %s758_s27 = sld [smem:[#allocation10 + $0x2]] }
  0x3f   :  { %v73_v1 = vstv %s72_s3  ;;  %s760_s2 = sld [smem:[#allocation8 + $0x4]]  ;;  %v83_v4 = vstv %s444_s18  ;;  %s762_s28 = sld [smem:[#allocation7 + $0x5]] }
  0x40   :  { %v74_v2 = vmul.f32 %v73_v1, %v749_v0  ;;  %v76_v3 = vstv %s75_s17  ;;  %v86_v5 = vstv %s445_s19  ;;  %s764_s29 = sld [smem:[#allocation8 + $0x5]]  ;;  %v84_v7 = vmul.f32 %v83_v4, %v749_v0  ;;  %s767_s30 = sld [smem:[#allocation10 + $0x3]] }
  0x41   :  { %v93_v8 = vstv %s447_s20  ;;  %s769_s6 = sld [smem:[#allocation7 + $0x6]]  ;;  %s772_s7 = sld [smem:[#allocation10 + $0x4]]  ;;  %v79_v17 = vstv %s751_s21 }
  0x42   :  { %v77_v6 = vadd.f32 %v76_v3, %v74_v2  ;;  %v94_v9 = vmul.f32 %v93_v8, %v749_v0  ;;  %v96_v10 = vstv %s448_s22  ;;  %s774_s8 = sld [smem:[#allocation8 + $0x6]]  ;;  %v87_v11 = vadd.f32 %v86_v5, %v84_v7  ;;  %s777_s9 = sld [smem:[#allocation7 + $0x7]] }
  0x43   :  { %v104_v12 = vstv %s450_s23  ;;  %v107_v13 = vstv %s753_s24  ;;  %s779_s1 = sld [smem:[#allocation8 + $0x7]]  ;;  %s782_s10 = sld [smem:[#allocation7 + $0x8]]  ;;  %v89_v23 = vstv %s755_s25 }
  0x44   :  { %541 = vtanh.f32 %v77_v6  ;;  %v97_v14 = vadd.f32 %v96_v10, %v94_v9  ;;  %v105_v15 = vmul.f32 %v104_v12, %v749_v0  ;;  %v115_v16 = vstv %s453_s26  ;;  %s787_s11 = sld [smem:[#allocation10 + $0x5]]  ;;  %s789_s12 = sld [smem:[#allocation8 + $0x8]] }
  0x45   :  { %543 = vtanh.f32 %v87_v11  ;;  %v116_v18 = vmul.f32 %v115_v16, %v749_v0  ;;  %v118_v19 = vstv %s760_s2  ;;  %v126_v21 = vstv %s762_s28  ;;  %s793_s13 = sld [smem:[#allocation7 + $0x9]]  ;;  %s800_s15 = sld [smem:[#allocation7 + $0xa]] }
  0x46   :  { %545 = vtanh.f32 %v97_v14  ;;  %v108_v20 = vadd.f32 %v107_v13, %v105_v15  ;;  %v129_v22 = vstv %s764_s29  ;;  %s795_s14 = sld [smem:[#allocation8 + $0x9]]  ;;  %v127_v25 = vmul.f32 %v126_v21, %v749_v0  ;;  %s803_s16 = sld [smem:[#allocation10 + $0x6]] }
  0x47   :  { %v119_v24 = vadd.f32 %v118_v19, %v116_v18  ;;  %v137_v26 = vstv %s769_s6  ;;  %v99_v27 = vstv %s758_s27  ;;  %s807_s0 = sld [smem:[#allocation8 + $0xa]]  ;;  %s811_s3 = sld [smem:[#allocation7 + $0xb]]  ;;  %v110_v33 = vstv %s767_s30 }
  0x48   :  { %547 = vtanh.f32 %v108_v20  ;;  %v138_v28 = vmul.f32 %v137_v26, %v749_v0  ;;  %v140_v29 = vstv %s774_s8  ;;  %v130_v30 = vadd.f32 %v129_v22, %v127_v25  ;;  %s813_s17 = sld [smem:[#allocation8 + $0xb]]  ;;  %s816_s18 = sld [smem:[#allocation10 + $0x7]] }
  0x49   :  { %549 = vtanh.f32 %v119_v24  ;;  %v148_v31 = vstv %s777_s9  ;;  %v151_v32 = vstv %s779_s1  ;;  %v159_v36 = vstv %s782_s10  ;;  %s820_s19 = sld [smem:[#allocation7 + $0xc]]  ;;  %s829_s21 = sld [smem:[#allocation7 + $0xd]] }
  0x4a   :  { %v141_v34 = vadd.f32 %v140_v29, %v138_v28  ;;  %v149_v35 = vmul.f32 %v148_v31, %v749_v0  ;;  %v121_v37 = vstv %s772_s7  ;;  %551 = vtanh.f32 %v130_v30  ;;  %s825_s20 = sld [smem:[#allocation8 + $0xc]]  ;;  %s831_s22 = sld [smem:[#allocation8 + $0xd]] }
  0x4b   :  { %v160_v38 = vmul.f32 %v159_v36, %v749_v0  ;;  %v162_v39 = vstv %s789_s12  ;;  %v170_v41 = vstv %s793_s13  ;;  %v132_v44 = vstv %s787_s11  ;;  %s834_s23 = sld [smem:[#allocation10 + $0x8]]  ;;  %s838_s24 = sld [smem:[#allocation7 + $0xe]] }
  0x4c   :  { %553 = vtanh.f32 %v141_v34  ;;  %v152_v40 = vadd.f32 %v151_v32, %v149_v35  ;;  %v173_v42 = vstv %s795_s14  ;;  %v171_v46 = vmul.f32 %v170_v41, %v749_v0  ;;  %s842_s25 = sld [smem:[#allocation8 + $0xe]]  ;;  %s844_s26 = sld [smem:[#allocation10 + $0x9]] }
  0x4d   :  { %v163_v45 = vadd.f32 %v162_v39, %v160_v38  ;;  %v181_v47 = vstv %s800_s15  ;;  %v184_v50 = vstv %s807_s0  ;;  %v192_v53 = vstv %s811_s3  ;;  %s848_s27 = sld [smem:[#allocation7 + $0xf]]  ;;  %s854_s28 = sld [smem:[#allocation10 + $0xa]] }
  0x4e   :  { %v542_v43 = vpop.eup %541  ;;  %555 = vtanh.f32 %v152_v40  ;;  %v182_v49 = vmul.f32 %v181_v47, %v749_v0  ;;  %v174_v52 = vadd.f32 %v173_v42, %v171_v46  ;;  %v195_v54 = vstv %s813_s17  ;;  %s852_s2 = sld [smem:[#allocation8 + $0xf]]  ;;  %s860_s29 = sld [smem:[#allocation7 + $0x10]] }
  0x4f   :  { %v80_v48 = vmul.f32 %v542_v43, %v79_v17  ;;  %v544_v51 = vpop.eup %543  ;;  %557 = vtanh.f32 %v163_v45  ;;  %v143_v57 = vstv %s803_s16  ;;  %v193_v59 = vmul.f32 %v192_v53, %v749_v0  ;;  %s862_s30 = sld [smem:[#allocation8 + $0x10]]  ;;  %s864_s6 = sld [smem:[#allocation10 + $0xb]] }
  0x50   :  { %v546_v55 = vpop.eup %545  ;;  %v90_v56 = vmul.f32 %v544_v51, %v89_v23  ;;  %v185_v58 = vadd.f32 %v184_v50, %v182_v49  ;;  %559 = vtanh.f32 %v174_v52  ;;  %v203_v61 = vstv %s820_s19  ;;  %s869_s7 = sld [smem:[#allocation7 + $0x11]]  ;;  %s872_s8 = sld [smem:[#allocation10 + $0xc]] }
  0x51   :  { %v100_v60 = vmul.f32 %v546_v55, %v99_v27  ;;  %v206_v62 = vstv %s825_s20  ;;  %v154_v1 = vstv %s816_s18  ;;  %v196_v2 = vadd.f32 %v195_v54, %v193_v59  ;;  %s876_s9 = sld [smem:[#allocation8 + $0x11]]  ;;  %s878_s1 = sld [smem:[#allocation10 + $0xd]] }
  0x52   :  { %v548_v63 = vpop.eup %547  ;;  %561 = vtanh.f32 %v185_v58  ;;  %v204_v3 = vmul.f32 %v203_v61, %v749_v0  ;;  %v214_v7 = vstv %s829_s21  ;;  %v217_v8 = vstv %s831_s22  ;;  %s880_s10 = sld [smem:[#allocation7 + $0x12]]  ;;  %s883_s11 = sld [smem:[#allocation10 + $0xe]] }
  0x53   :  { %v550_v4 = vpop.eup %549  ;;  %v101_v5 = vadd.f32 %v100_v60, %v80_v48  ;;  %v111_v6 = vmul.f32 %v548_v63, %v110_v33  ;;  %563 = vtanh.f32 %v196_v2  ;;  %v215_v11 = vmul.f32 %v214_v7, %v749_v0  ;;  %s887_s12 = sld [smem:[#allocation8 + $0x12]]  ;;  %s891_s13 = sld [smem:[#allocation7 + $0x13]] }
  0x54   :  { %v122_v9 = vmul.f32 %v550_v4, %v121_v37  ;;  %v207_v10 = vadd.f32 %v206_v62, %v204_v3  ;;  %v552_v12 = vpop.eup %551  ;;  %v165_v14 = vstv %s834_s23  ;;  %v225_v15 = vstv %s838_s24  ;;  %s893_s14 = sld [smem:[#allocation8 + $0x13]]  ;;  %s898_s15 = sld [smem:[#allocation7 + $0x14]] }
  0x55   :  { %v112_v13 = vadd.f32 %v111_v6, %v90_v56  ;;  %v228_v16 = vstv %s842_s25  ;;  %v133_v19 = vmul.f32 %v552_v12, %v132_v44  ;;  %v218_v20 = vadd.f32 %v217_v8, %v215_v11  ;;  %s900_s16 = sld [smem:[#allocation8 + $0x14]]  ;;  %s903_s0 = sld [smem:[#allocation10 + $0xf]] }
  0x56   :  { %v554_v17 = vpop.eup %553  ;;  %v123_v18 = vadd.f32 %v122_v9, %v101_v5  ;;  %565 = vtanh.f32 %v207_v10  ;;  %v176_v22 = vstv %s844_s26  ;;  %v226_v23 = vmul.f32 %v225_v15, %v749_v0  ;;  %s905_s3 = sld [smem:[#allocation10 + $0x10]]  ;;  %s909_s17 = sld [smem:[#allocation7 + $0x15]] }
  0x57   :  { %v144_v21 = vmul.f32 %v554_v17, %v143_v57  ;;  %v236_v24 = vstv %s848_s27  ;;  %v134_v26 = vadd.f32 %v133_v19, %v112_v13  ;;  %567 = vtanh.f32 %v218_v20  ;;  %s911_s18 = sld [smem:[#allocation8 + $0x15]]  ;;  %s918_s19 = sld [smem:[#allocation7 + $0x16]] }
  0x58   :  { %v556_v25 = vpop.eup %555  ;;  %v237_v27 = vmul.f32 %v236_v24, %v749_v0  ;;  %v239_v28 = vstv %s852_s2  ;;  %v187_v32 = vstv %s854_s28  ;;  %v229_v33 = vadd.f32 %v228_v16, %v226_v23  ;;  %s920_s20 = sld [smem:[#allocation8 + $0x16]]  ;;  %s922_s21 = sld [smem:[#allocation10 + $0x11]] }
  0x59   :  { %v558_v29 = vpop.eup %557  ;;  %v145_v30 = vadd.f32 %v144_v21, %v123_v18  ;;  %v155_v31 = vmul.f32 %v556_v25, %v154_v1  ;;  %v247_v36 = vstv %s860_s29  ;;  %v250_v37 = vstv %s862_s30  ;;  %s929_s22 = sld [smem:[#allocation7 + $0x17]]  ;;  %s936_s24 = sld [smem:[#allocation7 + $0x18]] }
  0x5a   :  { %v166_v34 = vmul.f32 %v558_v29, %v165_v14  ;;  %v240_v35 = vadd.f32 %v239_v28, %v237_v27  ;;  %v560_v38 = vpop.eup %559  ;;  %v198_v40 = vstv %s864_s6  ;;  %569 = vtanh.f32 %v229_v33  ;;  %s931_s23 = sld [smem:[#allocation8 + $0x17]]  ;;  %s938_s25 = sld [smem:[#allocation8 + $0x18]] }
  0x5b   :  { %v156_v39 = vadd.f32 %v155_v31, %v134_v26  ;;  %v248_v41 = vmul.f32 %v247_v36, %v749_v0  ;;  %v177_v44 = vmul.f32 %v560_v38, %v176_v22  ;;  %v258_v45 = vstv %s869_s7  ;;  %s941_s26 = sld [smem:[#allocation10 + $0x12]]  ;;  %s943_s27 = sld [smem:[#allocation10 + $0x13]] }
  0x5c   :  { %v562_v42 = vpop.eup %561  ;;  %v167_v43 = vadd.f32 %v166_v34, %v145_v30  ;;  %571 = vtanh.f32 %v240_v35  ;;  %v259_v48 = vmul.f32 %v258_v45, %v749_v0  ;;  %v261_v49 = vstv %s876_s9  ;;  %s949_s2 = sld [smem:[#allocation7 + $0x19]]  ;;  %s953_s29 = sld [smem:[#allocation10 + $0x14]] }
  0x5d   :  { %v188_v46 = vmul.f32 %v562_v42, %v187_v32  ;;  %v251_v47 = vadd.f32 %v250_v37, %v248_v41  ;;  %v564_v50 = vpop.eup %563  ;;  %v178_v51 = vadd.f32 %v177_v44, %v156_v39  ;;  %v209_v52 = vstv %s872_s8  ;;  %s951_s28 = sld [smem:[#allocation8 + $0x19]]  ;;  %s958_s30 = sld [smem:[#allocation7 + $0x1a]] }
  0x5e   :  { %v220_v53 = vstv %s878_s1  ;;  %v269_v54 = vstv %s880_s10  ;;  %v199_v55 = vmul.f32 %v564_v50, %v198_v40  ;;  %v262_v56 = vadd.f32 %v261_v49, %v259_v48  ;;  %s960_s6 = sld [smem:[#allocation8 + $0x1a]]  ;;  %s962_s7 = sld [smem:[#allocation10 + $0x15]] }
  0x5f   :  { %573 = vtanh.f32 %v251_v47  ;;  %v272_v57 = vstv %s887_s12  ;;  %v231_v59 = vstv %s883_s11  ;;  %v270_v60 = vmul.f32 %v269_v54, %v749_v0  ;;  %s968_s8 = sld [smem:[#allocation7 + $0x1b]]  ;;  %s975_s1 = sld [smem:[#allocation7 + $0x1c]] }
  0x60   :  { %v566_v58 = vpop.eup %565  ;;  %v280_v61 = vstv %s891_s13  ;;  %v283_v62 = vstv %s893_s14  ;;  %v189_v63 = vadd.f32 %v188_v46, %v167_v43  ;;  %575 = vtanh.f32 %v262_v56  ;;  %s970_s9 = sld [smem:[#allocation8 + $0x1b]]  ;;  %s977_s10 = sld [smem:[#allocation8 + $0x1c]] }
  0x61   :  { %v210_v1 = vmul.f32 %v566_v58, %v209_v52  ;;  %v281_v2 = vmul.f32 %v280_v61, %v749_v0  ;;  %v568_v3 = vpop.eup %567  ;;  %v200_v4 = vadd.f32 %v199_v55, %v178_v51  ;;  %v273_v5 = vadd.f32 %v272_v57, %v270_v60  ;;  %s980_s11 = sld [smem:[#allocation10 + $0x16]]  ;;  %s986_s12 = sld [smem:[#allocation7 + $0x1d]] }
  0x62   :  { %v291_v6 = vstv %s898_s15  ;;  %v294_v7 = vstv %s900_s16  ;;  %v221_v8 = vmul.f32 %v568_v3, %v220_v53  ;;  %v242_v9 = vstv %s903_s0  ;;  %s988_s13 = sld [smem:[#allocation8 + $0x1d]]  ;;  %s990_s14 = sld [smem:[#allocation10 + $0x17]] }
  0x63   :  { %v284_v10 = vadd.f32 %v283_v62, %v281_v2  ;;  %v292_v11 = vmul.f32 %v291_v6, %v749_v0  ;;  %v253_v12 = vstv %s905_s3  ;;  %577 = vtanh.f32 %v273_v5  ;;  %s996_s15 = sld [smem:[#allocation7 + $0x1e]]  ;;  %s1000_s0 = sld [smem:[#allocation10 + $0x18]] }
  0x64   :  { %v302_v13 = vstv %s909_s17  ;;  %v305_v14 = vstv %s911_s18  ;;  %v570_v15 = vpop.eup %569  ;;  %v211_v16 = vadd.f32 %v210_v1, %v189_v63  ;;  %v222_v20 = vadd.f32 %v221_v8, %v200_v4  ;;  %s998_s16 = sld [smem:[#allocation8 + $0x1e]]  ;;  %s1006_s3 = sld [smem:[#allocation7 + $0x1f]] }
  0x65   :  { %579 = vtanh.f32 %v284_v10  ;;  %v295_v17 = vadd.f32 %v294_v7, %v292_v11  ;;  %v303_v18 = vmul.f32 %v302_v13, %v749_v0  ;;  %v232_v21 = vmul.f32 %v570_v15, %v231_v59  ;;  %s1008_s17 = sld [smem:[#allocation8 + $0x1f]]  ;;  %s1010_s18 = sld [smem:[#allocation10 + $0x19]] }
  0x66   :  { %v572_v19 = vpop.eup %571  ;;  %v313_v22 = vstv %s918_s19  ;;  %v316_v23 = vstv %s920_s20  ;;  %v264_v27 = vstv %s922_s21  ;;  %v324_v28 = vstv %s929_s22  ;;  %s1016_s19 = sld [smem:[#allocation10 + $0x1a]]  ;;  %s1022_s20 = sld [smem:[#allocation10 + $0x1b]] }
  0x67   :  { %v243_v24 = vmul.f32 %v572_v19, %v242_v9  ;;  %581 = vtanh.f32 %v295_v17  ;;  %v306_v25 = vadd.f32 %v305_v14, %v303_v18  ;;  %v314_v26 = vmul.f32 %v313_v22, %v749_v0  ;;  %s1028_s21 = sld [smem:[#allocation10 + $0x1c]]  ;;  %s527_s22 = sld [smem:[#allocation10 + $0x1d]] }
  0x68   :  { %v327_v29 = vstv %s931_s23  ;;  %v233_v31 = vadd.f32 %v232_v21, %v211_v16  ;;  %v325_v33 = vmul.f32 %v324_v28, %v749_v0  ;;  %v335_v36 = vstv %s936_s24  ;;  %s530_s23 = sld [smem:[#allocation10 + $0x1e]]  ;;  %s533_s24 = sld [smem:[#allocation10 + $0x1f]] }
  0x69   :  { %v574_v30 = vpop.eup %573  ;;  %583 = vtanh.f32 %v306_v25  ;;  %v317_v32 = vadd.f32 %v316_v23, %v314_v26  ;;  %v244_v34 = vadd.f32 %v243_v24, %v222_v20  ;;  %v338_v37 = vstv %s938_s25 }
  0x6a   :  { %v254_v35 = vmul.f32 %v574_v30, %v253_v12  ;;  %v576_v38 = vpop.eup %575  ;;  %v275_v39 = vstv %s941_s26  ;;  %v328_v40 = vadd.f32 %v327_v29, %v325_v33  ;;  %v336_v41 = vmul.f32 %v335_v36, %v749_v0 }
  0x6b   :  { %585 = vtanh.f32 %v317_v32  ;;  %v265_v42 = vmul.f32 %v576_v38, %v264_v27  ;;  %v286_v43 = vstv %s943_s27  ;;  %v346_v44 = vstv %s949_s2  ;;  %s697_s27 = smov [#allocation11]  }
  0x6c   :  { %v349_v45 = vstv %s951_s28  ;;  %v255_v46 = vadd.f32 %v254_v35, %v233_v31  ;;  %587 = vtanh.f32 %v328_v40  ;;  %v339_v47 = vadd.f32 %v338_v37, %v336_v41  ;;  %s432_s2 = sshll.u32 %s697_s27, 4  ;;  %s433_s2 = int_to_ptr.vmem [resolvable:$true] %s432_s2 }
  0x6d   :  { %v347_v48 = vmul.f32 %v346_v44, %v749_v0  ;;  %v578_v49 = vpop.eup %577  ;;  %v266_v50 = vadd.f32 %v265_v42, %v244_v34  ;;  %v297_v51 = vstv %s953_s29  ;;  %v357_v52 = vstv %s958_s30  ;;  %s663_s28 = scalar_lea.vmem %s433_s2, 128  ;;  %p668_p10 = scmp.lt.s32.totalorder %s433_s2, %s433_s2 }
  0x6e   :  { %v360_v53 = vstv %s960_s6  ;;  %v276_v55 = vmul.f32 %v578_v49, %v275_v39  ;;  %589 = vtanh.f32 %v339_v47  ;;  %v358_v57 = vmul.f32 %v357_v52, %v749_v0  ;;  %p664_p9 = scmp.ne.s32.totalorder %s433_s2, %s663_s28  ;;  %p669_p11 = scmp.lt.s32.totalorder %s663_s28, %s663_s28 }
  0x6f   :  { %v580_v54 = vpop.eup %579  ;;  %v350_v56 = vadd.f32 %v349_v45, %v347_v48  ;;  %v308_v59 = vstv %s962_s7  ;;  %v368_v60 = vstv %s968_s8  ;;  %v371_v61 = vstv %s970_s9 }
  0x70   :  { %v287_v58 = vmul.f32 %v580_v54, %v286_v43  ;;  %v277_v63 = vadd.f32 %v276_v55, %v255_v46  ;;  %v361_v1 = vadd.f32 %v360_v53, %v358_v57  ;;  %v369_v2 = vmul.f32 %v368_v60, %v749_v0  ;;  %p670_p12 = por %p669_p11, %p668_p10 }
  0x71   :  { %v582_v62 = vpop.eup %581  ;;  %591 = vtanh.f32 %v350_v56  ;;  %v379_v5 = vstv %s975_s1  ;;  %v382_v6 = vstv %s977_s10  ;;  %v319_v8 = vstv %s980_s11 }
  0x72   :  { %v288_v3 = vadd.f32 %v287_v58, %v266_v50  ;;  %v298_v4 = vmul.f32 %v582_v62, %v297_v51  ;;  %593 = vtanh.f32 %v361_v1  ;;  %v372_v9 = vadd.f32 %v371_v61, %v369_v2  ;;  %p671_p13 = pnand %p670_p12, %p664_p9 }
  0x73   :  { %v584_v7 = vpop.eup %583  ;;  %v380_v10 = vmul.f32 %v379_v5, %v749_v0  ;;  %v390_v13 = vstv %s986_s12  ;;  %v393_v14 = vstv %s988_s13  ;;  %v330_v16 = vstv %s990_s14 }
  0x74   :  { %v299_v11 = vadd.f32 %v298_v4, %v277_v63  ;;  %v309_v12 = vmul.f32 %v584_v7, %v308_v59  ;;  %595 = vtanh.f32 %v372_v9  ;;  %v391_v18 = vmul.f32 %v390_v13, %v749_v0 }
  0x75   :  { %v586_v15 = vpop.eup %585  ;;  %v383_v17 = vadd.f32 %v382_v6, %v380_v10  ;;  %v401_v21 = vstv %s996_s15  ;;  %v404_v22 = vstv %s998_s16  ;;  %v341_v24 = vstv %s1000_s0 }
  0x76   :  { %v310_v19 = vadd.f32 %v309_v12, %v288_v3  ;;  %v320_v20 = vmul.f32 %v586_v15, %v319_v8  ;;  %v588_v23 = vpop.eup %587  ;;  %v394_v25 = vadd.f32 %v393_v14, %v391_v18  ;;  %v402_v26 = vmul.f32 %v401_v21, %v749_v0 }
  0x77   :  { %597 = vtanh.f32 %v383_v17  ;;  %v331_v28 = vmul.f32 %v588_v23, %v330_v16  ;;  %v412_v29 = vstv %s1006_s3  ;;  %v415_v30 = vstv %s1008_s17 }
  0x78   :  { %v321_v27 = vadd.f32 %v320_v20, %v299_v11  ;;  %v590_v31 = vpop.eup %589  ;;  %v352_v32 = vstv %s1010_s18  ;;  %599 = vtanh.f32 %v394_v25  ;;  %v405_v33 = vadd.f32 %v404_v22, %v402_v26 }
  0x79   :  { %v413_v34 = vmul.f32 %v412_v29, %v749_v0  ;;  %v332_v35 = vadd.f32 %v331_v28, %v310_v19  ;;  %v342_v36 = vmul.f32 %v590_v31, %v341_v24  ;;  %v363_v38 = vstv %s1016_s19 }
  0x7a   :  { %601 = vtanh.f32 %v405_v33  ;;  %v374_v43 = vstv %s1022_s20  ;;  %v385_v47 = vstv %s1028_s21  ;;  %v396_v50 = vstv %s527_s22 }
  0x7b   :  { %v592_v37 = vpop.eup %591  ;;  %v416_v39 = vadd.f32 %v415_v30, %v413_v34  ;;  %v343_v40 = vadd.f32 %v342_v36, %v321_v27  ;;  %v407_v54 = vstv %s530_s23  ;;  %v418_v58 = vstv %s533_s24 }
  0x7c   :  { %v353_v41 = vmul.f32 %v592_v37, %v352_v32  ;;  %v594_v42 = vpop.eup %593  ;;  %v423_v2 = vstv %s1057_s4 }
  0x7d   :  { %603 = vtanh.f32 %v416_v39  ;;  %v364_v45 = vmul.f32 %v594_v42, %v363_v38 }
  0x7e   :  { %v354_v44 = vadd.f32 %v353_v41, %v332_v35  ;;  %v596_v46 = vpop.eup %595 }
  0x7f   :  { %v365_v48 = vadd.f32 %v364_v45, %v343_v40  ;;  %v375_v0 = vmul.f32 %v596_v46, %v374_v43 }
  0x81   :  { %v598_v49 = vpop.eup %597  ;;  %v376_v51 = vadd.f32 %v375_v0, %v354_v44 }
  0x82   :  { %v386_v52 = vmul.f32 %v598_v49, %v385_v47  ;;  %v600_v53 = vpop.eup %599 }
  0x83   :  { %v397_v56 = vmul.f32 %v600_v53, %v396_v50 }
  0x84   :  { %v387_v55 = vadd.f32 %v386_v52, %v365_v48  ;;  %v602_v57 = vpop.eup %601 }
  0x85   :  { %v398_v59 = vadd.f32 %v397_v56, %v376_v51  ;;  %v408_v60 = vmul.f32 %v602_v57, %v407_v54 }
  0x87   :  { %v604_v61 = vpop.eup %603  ;;  %v409_v62 = vadd.f32 %v408_v60, %v387_v55 }
  0x88   :  { %v419_v63 = vmul.f32 %v604_v61, %v418_v58 }
  0x8a   :  { %v420_v1 = vadd.f32 %v419_v63, %v398_v59 }
  0x8c   :  { %v421_v3 = vadd.f32 %v420_v1, %v409_v62 }
  0x8e   :  { %v424_v4 = vadd.f32 %v423_v2, %v421_v3 }
  0x90   :  { %425 = vst [vmem:[#allocation11] sm:$0xff] %v424_v4 }
  0x91   :  { %674 = shalt.err (!%p671_p13)
}
  0x92   :  { %s675_s6 = scalar_lea.hbm %s1058_s5, 128 }
  0x93   :  { %p676_p0 = scmp.ne.s32.totalorder %s1058_s5, %s675_s6  ;;  %p679_p1 = scmp.lt.u32.totalorder %s675_s6, %s1058_s5 }
  0x95   :  { %p681_p2 = pnand %p679_p1, %p676_p0 }
  0x97   :  { %684 = shalt.err (!%p681_p2)
}
  0x98   :  { %435 = dma.vmem_to_hbm [thread:$0]  %s433_s2, 128, %s1058_s5, [#allocation5]  }
  0x99   :  { %691 = dma.done.wait [#allocation5], 128  }
  0x9a   :  { %692 = vsyncadd [#allocation5], 4294967168 }
  0x9b   :  { %439 = vsyncpa [#allocation4], 1 }
  0x9c   :  { %440 = vsyncpa [#allocation5], 1 }
  0x9d   :  { %441 = vsyncpa [#allocation6], 1 }
  0x9e   :  { %442 = vsyncpa [#allocation9], 1 }

</bundles_post_ra>
